<compile_context>
chip_gen: v5e
topology: v5e:2x2
jax: 0.10.0
libtpu: 0.0.40
codegen_flags: <defaults>
</compile_context>

<pallas_src>
import math

import jax
import jax.numpy as jnp
from jax.experimental import pallas as pl
from jax.experimental.pallas import tpu as pltpu


def _add_w_kernel(x_ref, w_ref, o_ref):
    # x_ref: (TB, F) block of flattened rows
    # w_ref: (1, F)  resident parameter row (same block every grid step)
    # Broadcast add over the row (sublane) axis; promotes dtypes as needed.
    o_ref[...] = (x_ref[...] + w_ref[...]).astype(o_ref.dtype)


def _choose_block_rows(rows, bytes_per_row, itemsize):
    """Pick rows-per-tile.

    Goals:
      * ~4 MiB tiles (amortize ~0.35 us per-step overhead to a few percent)
      * >= ~8 grid steps when rows permit (>= 2-4 pipelined steps per v7x
        TensorCore, so input/output DMA overlap in steady state)
      * sublane-pack aligned block rows
      * prefer a block size that divides rows (no ragged masked tail)
    """
    # sublane packing multiple: 8 for f32, 16 for bf16, 32 for int8
    sub = 8 * max(1, 4 // max(1, itemsize))
    if rows <= sub:
        return rows

    target_bytes = 4 * 1024 * 1024
    min_steps = 8

    # Cap by per-tile byte budget.
    tb_bytes = max(sub, (target_bytes // max(1, bytes_per_row)) // sub * sub)
    # Cap so there are >= min_steps grid steps whenever rows permit.
    tb_steps = max(sub, (rows // min_steps) // sub * sub)

    tb = min(tb_bytes, tb_steps, rows)
    tb = max(tb, sub)
    tb = min(tb, rows)

    # Prefer a tb that divides rows, searching downward in sublane-aligned
    # steps (but not below half the chosen size, to keep tiles big).
    if rows % tb != 0:
        cand = (tb // sub) * sub
        lo = max(sub, tb // 2)
        while cand >= lo:
            if rows % cand == 0:
                return cand
            cand -= sub
    return tb


def w_jia_forward(x, w_m, *, alias_input=False):
    """x: (..., C, D), w_m: (C, D) -> x + w_m (broadcast over leading dims)."""
    C, D = w_m.shape
    assert x.shape[-2:] == (C, D), f"trailing dims of x {x.shape} must be {(C, D)}"

    out_dtype = jnp.promote_types(x.dtype, w_m.dtype)

    F = C * D
    rows = x.size // F  # all leading (batch) dims flattened
    itemsize = jnp.dtype(x.dtype).itemsize

    # Row-major reshape keeps C-then-D ordering, so the flattened w_m lines up
    # element-for-element with each flattened row of x.
    x2 = x.reshape(rows, F)
    w2 = w_m.reshape(1, F)

    # Lane folding: if F is not a multiple of 128, fold k rows into the lane
    # dimension so the kernel's last dim is lane-dense (unmasked stores).
    k = 128 // math.gcd(F, 128)
    if k > 1 and rows % k == 0 and rows >= k:
        rows = rows // k
        x2 = x2.reshape(rows, k * F)
        w2 = jnp.tile(w2, (1, k))
        F = k * F
    # else: still correct; just falls back to (possibly masked) narrower lanes.

    tb = _choose_block_rows(rows, F * itemsize, itemsize)
    grid = (pl.cdiv(rows, tb),)

    io_aliases = {}
    if alias_input and x.dtype == out_dtype:
        # Output reuses x's HBM buffer (use only when x is donated upstream).
        io_aliases = {0: 0}

    out2 = pl.pallas_call(
        _add_w_kernel,
        out_shape=jax.ShapeDtypeStruct((rows, F), out_dtype),
        grid=grid,
        in_specs=[
            # many rows per grid step, lane-dense last dim
            pl.BlockSpec((tb, F), lambda i: (i, 0)),
            # parameter: same (1, F) block every step -> stays resident in VMEM
            pl.BlockSpec((1, F), lambda i: (0, 0)),
        ],
        out_specs=pl.BlockSpec((tb, F), lambda i: (i, 0)),
        input_output_aliases=io_aliases,
        compiler_params=pltpu.CompilerParams(
            dimension_semantics=("parallel",),
            vmem_limit_bytes=48 * 1024 * 1024,
        ),
    )(x2, w2)

    return out2.reshape(x.shape).astype(out_dtype)


if __name__ == "__main__":
    # Small shapes consistent with the module: c=4, dime=32, batch=2
    B, C, D = 2, 4, 32

    key = jax.random.PRNGKey(0)
    x = jax.random.normal(key, (B, C, D), dtype=jnp.float32)

    # Deterministic parameter init mirroring torch.ones(c, dime)
    w_m = jnp.ones((C, D), dtype=jnp.float32)

    out = jax.block_until_ready(w_jia_forward(x, w_m))
    ref = x + w_m
    assert out.shape == (B, C, D)
    assert out.dtype == ref.dtype
    assert jnp.allclose(out, ref, atol=1e-6), "mismatch vs reference (main)"

    # Extra sanity: multi-step grid path (rows > one sublane pack).
    x2 = jax.random.normal(jax.random.PRNGKey(1), (64, C, D), dtype=jnp.float32)
    out2 = jax.block_until_ready(w_jia_forward(x2, w_m))
    assert jnp.allclose(out2, x2 + w_m, atol=1e-6), "mismatch vs reference (multi-step)"

    # Extra sanity: lane-folding path (C*D = 64, folded to 128 lanes).
    w_small = jnp.ones((C, 16), dtype=jnp.float32)
    x3 = jax.random.normal(jax.random.PRNGKey(2), (8, C, 16), dtype=jnp.float32)
    out3 = jax.block_until_ready(w_jia_forward(x3, w_small))
    assert jnp.allclose(out3, x3 + w_small, atol=1e-6), "mismatch vs reference (folded)"

    print("KERNEL_OK")
</pallas_src>

<mosaic_0001>
module attributes {stable_mosaic.version = 11 : i64} {
  func.func @_add_w_kernel(%arg0: i32, %arg1: memref<2x128xf32, #tpu.memory_space<vmem>>, %arg2: memref<1x128xf32, #tpu.memory_space<vmem>>, %arg3: memref<2x128xf32, #tpu.memory_space<vmem>>) attributes {dimension_semantics = [#tpu.dimension_semantics<parallel>], iteration_bounds = array<i64: 1>, scalar_prefetch = 0 : i64, scratch_operands = 0 : i64, tpu.core_type = #tpu.core_type<tc>, window_params = [{transform_indices = @transform_0, window_bounds = array<i64: 2, 128>}, {pipeline_mode = #tpu.pipeline_mode<synchronous>, transform_indices = @transform_1, window_bounds = array<i64: 1, 128>}, {transform_indices = @transform_2, window_bounds = array<i64: 2, 128>}]} {
    %c0 = arith.constant 0 : index
    %c0_0 = arith.constant 0 : index
    %0 = vector.load %arg1[%c0, %c0_0] : memref<2x128xf32, #tpu.memory_space<vmem>>, vector<2x128xf32>
    %c0_1 = arith.constant 0 : index
    %c0_2 = arith.constant 0 : index
    %1 = vector.load %arg2[%c0_1, %c0_2] : memref<1x128xf32, #tpu.memory_space<vmem>>, vector<1x128xf32>
    %2 = vector.broadcast %1 : vector<1x128xf32> to vector<2x128xf32>
    %3 = arith.addf %0, %2 : vector<2x128xf32>
    %c0_3 = arith.constant 0 : index
    %c0_4 = arith.constant 0 : index
    %4 = vector.load %arg3[%c0_3, %c0_4] : memref<2x128xf32, #tpu.memory_space<vmem>>, vector<2x128xf32>
    tpu.vector_store %arg3[%c0_3, %c0_4], %3 {strides = array<i32>} : memref<2x128xf32, #tpu.memory_space<vmem>>, vector<2x128xf32>,
    return
  }
  func.func @transform_0(%arg0: i32) -> (i32, i32) {
    %c0_i32 = arith.constant 0 : i32
    %c0_i32_0 = arith.constant 0 : i32
    return %arg0, %c0_i32 : i32, i32
  }
  func.func @transform_1(%arg0: i32) -> (i32, i32) {
    %c0_i32 = arith.constant 0 : i32
    %c0_i32_0 = arith.constant 0 : i32
    %c0_i32_1 = arith.constant 0 : i32
    return %c0_i32, %c0_i32_0 : i32, i32
  }
  func.func @transform_2(%arg0: i32) -> (i32, i32) {
    %c0_i32 = arith.constant 0 : i32
    %c0_i32_0 = arith.constant 0 : i32
    return %arg0, %c0_i32 : i32, i32
  }
}

</mosaic_0001>

<bundles_post_ra>
// kernel: tpu_custom_call.1
= control target key start
LH: loop header
LB: loop body
LE: loop exit
PB: predicated region body
PF: predicated region fallthrough
CT: control target
= control target key end

     0   :  { %7 = vsyncpa [#allocation3], 0  ;;  %s174_s0 = inlined_call_operand.hbm [shape: f32[2,128], index: 0, kind: input, shape index: {}]   ;;  %s175_s1 = inlined_call_operand.hbm [shape: f32[1,128], index: 1, kind: input, shape index: {}]   ;;  %s176_s2 = inlined_call_operand.hbm [shape: f32[2,128], index: 2, kind: output, shape index: {}]  }
   0x1   :  { %8 = vsyncpa [#allocation6], 0 }
   0x2   :  { %9 = vsyncpa [#allocation4], 0  ;;  %s15_s11 = sshll.u32 %s174_s0, 4  ;;  %s147_s12 = smov [#allocation2]   ;;  %s16_s11 = int_to_ptr.hbm [resolvable:$true] %s15_s11 }
   0x3   :  { %s17_s13 = sshll.u32 %s147_s12, 4  ;;  %s26_s16 = sshll.u32 %s175_s1, 4  ;;  %s18_s13 = int_to_ptr.vmem [resolvable:$true] %s17_s13  ;;  %s27_s16 = int_to_ptr.hbm [resolvable:$true] %s26_s16 }
   0x4   :  { %20 = dma.hbm_to_vmem [thread:$0]  %s16_s11, 32, %s18_s13, [#allocation3]  }
   0x5   :  { %s148_s17 = smov [#allocation5]  }
   0x6   :  { %s28_s18 = sshll.u32 %s148_s17, 4  ;;  %s29_s18 = int_to_ptr.vmem [resolvable:$true] %s28_s18 }
   0x7   :  { %31 = dma.hbm_to_vmem [thread:$0]  %s27_s16, 16, %s29_s18, [#allocation6]  }
   0x8   :  { %141 = dma.done.wait [#allocation3], 32  }
   0x9   :  { %142 = vsyncadd [#allocation3], 4294967264 }
   0xa   :  { %143 = dma.done.wait [#allocation6], 16  }
   0xb   :  { %144 = vsyncadd [#allocation6], 4294967280  ;;  %s149_s19 = smov [#allocation7]   ;;  %s54_s22 = sshll.u32 %s176_s2, 4  ;;  %v40_v0 = vld [vmem:[#allocation2] sm:$0x3]  ;;  %s55_s22 = int_to_ptr.hbm [resolvable:$true] %s54_s22 }
   0xc   :  { %s52_s0 = sshll.u32 %s149_s19, 4  ;;  %v68_v1 = vld [vmem:[#allocation5] ss:$0 sm:$0xff]  ;;  %s53_s0 = int_to_ptr.vmem [resolvable:$true] %s52_s0 }
   0xd   :  { %v45_v2 = vadd.f32 %v68_v1, %v40_v0 }
   0xf   :  { %46 = vst [vmem:[#allocation7] sm:$0x3] %v45_v2 }
  0x10   :  { %57 = dma.vmem_to_hbm [thread:$0]  %s53_s0, 32, %s55_s22, [#allocation4]  }
  0x11   :  { %145 = dma.done.wait [#allocation4], 32  }
  0x12   :  { %146 = vsyncadd [#allocation4], 4294967264 }
  0x13   :  { %62 = vsyncpa [#allocation3], 1 }
  0x14   :  { %63 = vsyncpa [#allocation6], 1 }
  0x15   :  { %64 = vsyncpa [#allocation4], 1 }

</bundles_post_ra>
